<compile_context>
chip_gen: v6e
topology: v6e:2x2x1
jax: 0.10.0
libtpu: 0.0.40
codegen_flags: <defaults>
</compile_context>

<pallas_src>
import functools

import jax
import jax.numpy as jnp
from jax import lax
from jax.experimental import pallas as pl
from jax.experimental.pallas import tpu as pltpu


def _round_up(v, m):
    return (v + m - 1) // m * m


def _rnn_seq_kernel(x_ref, h0_ref, wx_ref, wh_ref, out_ref, hfin_ref, xproj_ref,
                    *, seq_len, block_b, hidden_pad):
    """One batch block; the whole sequence is processed inside this single grid point.

    x_ref:    (T*block_b, K_pad)  bf16   rows ordered t-major, b-minor; ones column folded in
    h0_ref:   (block_b, H_pad)    f32    initial hidden for this batch block
    wx_ref:   (K_pad, N_f)        bf16   fused x-side weight (+ bias row + pad-logit mask)
    wh_ref:   (H_pad, N_f)        bf16   fused h-side weight
    out_ref:  (block_b, O_pad)    f32    final-step log-softmax
    hfin_ref: (block_b, H_pad)    f32    final hidden state
    xproj_ref:(T*block_b, N_f)    f32    VMEM scratch: batched x projection for all steps
    """
    # --- Batched input projection: one big MXU dot, off the serial recurrence chain. ---
    xproj_ref[...] = jnp.dot(x_ref[...], wx_ref[...], preferred_element_type=jnp.float32)

    wh = wh_ref[...]                      # bf16, resident for all steps

    # --- Serial recurrence: h carried in registers, one MXU dot per step. ---
    h = h0_ref[...]                       # f32 (block_b, H_pad)

    def step(t, h):
        row = pl.multiple_of(t * block_b, 8)
        acc = xproj_ref[pl.ds(row, block_b), :] + jnp.dot(
            h.astype(wh.dtype), wh, preferred_element_type=jnp.float32)
        return acc[:, :hidden_pad]        # lane-aligned slice -> new hidden

    if seq_len > 1:
        h = lax.fori_loop(0, seq_len - 1, step, h, unroll=True)

    # --- Final step: need both hidden and logits from the same accumulator. ---
    last = (seq_len - 1) * block_b
    acc = xproj_ref[pl.ds(last, block_b), :] + jnp.dot(
        h.astype(wh.dtype), wh, preferred_element_type=jnp.float32)

    hfin_ref[...] = acc[:, :hidden_pad]

    # Padded logit columns already hold ~-1e30 (mask folded into the Wx bias row).
    logits = acc[:, hidden_pad:]
    m = jnp.max(logits, axis=1, keepdims=True)
    shifted = logits - m
    lse = jnp.log(jnp.sum(jnp.exp(shifted), axis=1, keepdims=True))
    out_ref[...] = shifted - lse


@jax.jit
def rnn_sequence(x_seq, h0, w_i2h_t, b_i2h, w_i2o_t, b_i2o):
    """Run the RNN cell over a sequence.

    x_seq:   (T, B, input_size)
    h0:      (B, hidden_size)
    w_i2h_t: (input_size + hidden_size, hidden_size)   i2h weight, transposed
    b_i2h:   (1, hidden_size)
    w_i2o_t: (input_size + hidden_size, output_size)   i2o weight, transposed
    b_i2o:   (1, output_size)

    Returns (log_softmax(output_T), hidden_T): the module's forward applied T times, with the
    log-softmax materialized for the final (consumed) step.
    """
    T, B, I = x_seq.shape
    H = h0.shape[1]
    O = w_i2o_t.shape[1]

    f32, bf16 = jnp.float32, jnp.bfloat16
    NEG = -1e30                      # folded mask for padded logit columns

    K = I + 1                        # +1: ones column -> bias folding
    K_pad = _round_up(K, 16)         # small sublane/packing alignment only; NOT padded to 128
    H_pad = _round_up(H, 128)
    O_pad = _round_up(O, 128)
    N_f = H_pad + O_pad

    # Batch tiling: sublane-aligned blocks, capped at 128 rows; prefer >=2 blocks when B permits
    # so the "parallel" grid axis can feed both v7x TensorCores.
    B_pad8 = _round_up(B, 8)
    block_b = min(B_pad8, 128)
    if B_pad8 >= 16:
        block_b = min(block_b, _round_up((B_pad8 + 1) // 2, 8))
    B_pad = _round_up(B_pad8, block_b)
    n_bblk = B_pad // block_b

    # --- Pack / pad inputs (zero padding is mathematically inert). ---
    x_pad = jnp.zeros((T, B_pad, K_pad), bf16)
    x_pad = x_pad.at[:, :B, :I].set(x_seq.astype(bf16))
    x_pad = x_pad.at[:, :, I].set(1.0)                               # ones column -> bias term
    # Reorder into per-batch-block 2D slabs: rows within a block are (t, b_local), t-major.
    x_blk = (x_pad.reshape(T, n_bblk, block_b, K_pad)
                  .transpose(1, 0, 2, 3)
                  .reshape(n_bblk, T * block_b, K_pad))

    h0_pad = jnp.zeros((B_pad, H_pad), f32).at[:B, :H].set(h0.astype(f32))

    # Fused, padded weights: columns [0:H_pad) -> i2h, [H_pad:H_pad+O) -> i2o, rest masked.
    wx = jnp.zeros((K_pad, N_f), f32)
    wx = wx.at[:I, :H].set(w_i2h_t[:I, :].astype(f32))
    wx = wx.at[:I, H_pad:H_pad + O].set(w_i2o_t[:I, :].astype(f32))
    wx = wx.at[I, :H].set(b_i2h.reshape(-1).astype(f32))             # folded biases
    wx = wx.at[I, H_pad:H_pad + O].set(b_i2o.reshape(-1).astype(f32))
    wx = wx.at[I, H_pad + O:].set(NEG)                                # folded pad-logit mask
    wx = wx.astype(bf16)

    wh = jnp.zeros((H_pad, N_f), f32)
    wh = wh.at[:H, :H].set(w_i2h_t[I:, :].astype(f32))
    wh = wh.at[:H, H_pad:H_pad + O].set(w_i2o_t[I:, :].astype(f32))
    wh = wh.astype(bf16)

    kernel = functools.partial(_rnn_seq_kernel, seq_len=T, block_b=block_b, hidden_pad=H_pad)

    out_pad, hfin_pad = pl.pallas_call(
        kernel,
        out_shape=(
            jax.ShapeDtypeStruct((B_pad, O_pad), f32),
            jax.ShapeDtypeStruct((B_pad, H_pad), f32),
        ),
        grid=(n_bblk,),
        in_specs=[
            # whole-sequence slab for this batch block (leading block-index dim squeezed)
            pl.BlockSpec((None, T * block_b, K_pad), lambda bb: (bb, 0, 0)),
            pl.BlockSpec((block_b, H_pad), lambda bb: (bb, 0)),
            # weights: constant index maps -> DMA'd once, stay resident in VMEM
            pl.BlockSpec((K_pad, N_f), lambda bb: (0, 0)),
            pl.BlockSpec((H_pad, N_f), lambda bb: (0, 0)),
        ],
        out_specs=(
            pl.BlockSpec((block_b, O_pad), lambda bb: (bb, 0)),
            pl.BlockSpec((block_b, H_pad), lambda bb: (bb, 0)),
        ),
        scratch_shapes=[pltpu.VMEM((T * block_b, N_f), f32)],         # batched x projection
        compiler_params=pltpu.CompilerParams(
            dimension_semantics=("parallel",),
        ),
    )(x_blk, h0_pad, wx, wh)

    return out_pad[:B, :O], hfin_pad[:B, :H]


def init_params(key, input_size, hidden_size, output_size):
    """Deterministic init mimicking nn.Linear's uniform(-1/sqrt(fan_in), 1/sqrt(fan_in))."""
    k1, k2, k3, k4 = jax.random.split(key, 4)
    fan_in = input_size + hidden_size
    bound = 1.0 / jnp.sqrt(float(fan_in))
    # Stored pre-transposed: (in_features, out_features)
    w_i2h_t = jax.random.uniform(k1, (fan_in, hidden_size), jnp.float32, -bound, bound)
    b_i2h = jax.random.uniform(k2, (1, hidden_size), jnp.float32, -bound, bound)
    w_i2o_t = jax.random.uniform(k3, (fan_in, output_size), jnp.float32, -bound, bound)
    b_i2o = jax.random.uniform(k4, (1, output_size), jnp.float32, -bound, bound)
    return w_i2h_t, b_i2h, w_i2o_t, b_i2o


def rnn_sequence_ref(x_seq, h0, w_i2h_t, b_i2h, w_i2o_t, b_i2o, *, mxu_dtype=None):
    """Pure-JAX reference: apply the module's forward step-by-step.

    mxu_dtype=jnp.bfloat16 emulates the kernel's numerics (bf16 matmul operands, f32 accumulate,
    f32 log-softmax); mxu_dtype=None is the plain f32 semantics of the original module.
    """
    f32 = jnp.float32
    if mxu_dtype is None:
        def mm(a, w):
            return jnp.dot(a, w, preferred_element_type=f32)
    else:
        def mm(a, w):
            return jnp.dot(a.astype(mxu_dtype), w.astype(mxu_dtype),
                           preferred_element_type=f32)
        b_i2h = b_i2h.astype(mxu_dtype).astype(f32)
        b_i2o = b_i2o.astype(mxu_dtype).astype(f32)

    h = h0.astype(f32)
    logits = None
    for t in range(x_seq.shape[0]):
        combined = jnp.concatenate([x_seq[t].astype(f32), h], axis=1)
        logits = mm(combined, w_i2o_t) + b_i2o
        h = mm(combined, w_i2h_t) + b_i2h
    out = jax.nn.log_softmax(logits, axis=1)
    return out, h


if __name__ == "__main__":
    # Small shapes consistent with the char-classification RNN.
    T = 8             # sequence length (characters)
    batch = 2
    input_size = 16   # one-hot char vocab size (small synthetic)
    hidden_size = 32
    output_size = 8   # number of classes

    key = jax.random.PRNGKey(0)
    kx, kp = jax.random.split(key)
    x_seq = jax.random.normal(kx, (T, batch, input_size), jnp.float32)
    h0 = jnp.zeros((batch, hidden_size), jnp.float32)   # initHidden() analogue

    params = init_params(kp, input_size, hidden_size, output_size)

    out, h_fin = rnn_sequence(x_seq, h0, *params)
    jax.block_until_ready((out, h_fin))

    assert out.shape == (batch, output_size)
    assert h_fin.shape == (batch, hidden_size)

    # Tight check against a reference that matches the kernel's numerics (bf16 MXU operands,
    # f32 accumulation, f32 log-softmax).
    out_bf, h_bf = rnn_sequence_ref(x_seq, h0, *params, mxu_dtype=jnp.bfloat16)
    assert jnp.allclose(out, out_bf, atol=2e-3, rtol=2e-3)
    assert jnp.allclose(h_fin, h_bf, atol=2e-3, rtol=2e-3)

    # Loose sanity check against the pure-f32 module semantics (bounds bf16 drift over T steps).
    out_f32, h_f32 = rnn_sequence_ref(x_seq, h0, *params)
    assert jnp.allclose(out, out_f32, atol=0.25, rtol=0.1)
    assert jnp.allclose(h_fin, h_f32, atol=0.25, rtol=0.1)

    # log-softmax rows should sum (in prob space) to 1
    assert jnp.allclose(jnp.sum(jnp.exp(out), axis=1), 1.0, atol=1e-5)

    # T=1 is exactly one module forward() call — check single-step semantics too.
    out1, h1 = rnn_sequence(x_seq[:1], h0, *params)
    out1_bf, h1_bf = rnn_sequence_ref(x_seq[:1], h0, *params, mxu_dtype=jnp.bfloat16)
    assert jnp.allclose(out1, out1_bf, atol=2e-3, rtol=2e-3)
    assert jnp.allclose(h1, h1_bf, atol=2e-3, rtol=2e-3)

    print("KERNEL_OK")
</pallas_src>

<mosaic_0001>
module attributes {stable_mosaic.version = 11 : i64} {
  func.func @_rnn_seq_kernel(%arg0: i32, %arg1: memref<1x64x32xbf16, #tpu.memory_space<vmem>>, %arg2: memref<8x128xf32, #tpu.memory_space<vmem>>, %arg3: memref<32x256xbf16, #tpu.memory_space<vmem>>, %arg4: memref<128x256xbf16, #tpu.memory_space<vmem>>, %arg5: memref<8x128xf32, #tpu.memory_space<vmem>>, %arg6: memref<8x128xf32, #tpu.memory_space<vmem>>, %arg7: memref<64x256xf32, #tpu.memory_space<vmem>>) attributes {dimension_semantics = [#tpu.dimension_semantics<parallel>], iteration_bounds = array<i64: 1>, scalar_prefetch = 0 : i64, scratch_operands = 1 : i64, tpu.core_type = #tpu.core_type<tc>, window_params = [{transform_indices = @transform_0, window_bounds = array<i64: 1, 64, 32>}, {transform_indices = @transform_1, window_bounds = array<i64: 8, 128>}, {pipeline_mode = #tpu.pipeline_mode<synchronous>, transform_indices = @transform_2, window_bounds = array<i64: 32, 256>}, {pipeline_mode = #tpu.pipeline_mode<synchronous>, transform_indices = @transform_3, window_bounds = array<i64: 128, 256>}, {transform_indices = @transform_4, window_bounds = array<i64: 8, 128>}, {transform_indices = @transform_5, window_bounds = array<i64: 8, 128>}]} {
    %c0 = arith.constant 0 : index
    %c0_0 = arith.constant 0 : index
    %c0_1 = arith.constant 0 : index
    %0 = vector.load %arg1[%c0, %c0_0, %c0_1] : memref<1x64x32xbf16, #tpu.memory_space<vmem>>, vector<1x64x32xbf16>
    %1 = vector.shape_cast %0 : vector<1x64x32xbf16> to vector<64x32xbf16>
    %c0_2 = arith.constant 0 : index
    %c0_3 = arith.constant 0 : index
    %2 = vector.load %arg3[%c0_2, %c0_3] : memref<32x256xbf16, #tpu.memory_space<vmem>>, vector<32x256xbf16>
    %cst = arith.constant dense<0.000000e+00> : vector<64x256xf32>
    %3 = tpu.matmul %1, %2, %cst {dimension_numbers = #tpu.dot_dimension_numbers<[1], [0], [0], [1], [0, 0, 1, 1], [], []>} : vector<64x32xbf16>, vector<32x256xbf16>, vector<64x256xf32> -> vector<64x256xf32>
    %c0_4 = arith.constant 0 : index
    %c0_5 = arith.constant 0 : index
    %4 = vector.load %arg7[%c0_4, %c0_5] : memref<64x256xf32, #tpu.memory_space<vmem>>, vector<64x256xf32>
    tpu.vector_store %arg7[%c0_4, %c0_5], %3 {strides = array<i32>} : memref<64x256xf32, #tpu.memory_space<vmem>>, vector<64x256xf32>,
    %c0_6 = arith.constant 0 : index
    %c0_7 = arith.constant 0 : index
    %5 = vector.load %arg4[%c0_6, %c0_7] : memref<128x256xbf16, #tpu.memory_space<vmem>>, vector<128x256xbf16>
    %c0_8 = arith.constant 0 : index
    %c0_9 = arith.constant 0 : index
    %6 = vector.load %arg2[%c0_8, %c0_9] : memref<8x128xf32, #tpu.memory_space<vmem>>, vector<8x128xf32>
    %c0_i32 = arith.constant 0 : i32
    %c8_i32 = arith.constant 8 : i32
    %7 = arith.muli %c0_i32, %c8_i32 : i32
    %8 = tpu.assume_multiple %7, 8 : i32
    %9 = arith.index_cast %8 : i32 to index
    %c0_10 = arith.constant 0 : index
    %10 = vector.load %arg7[%9, %c0_10] : memref<64x256xf32, #tpu.memory_space<vmem>>, vector<8x256xf32>
    %11 = arith.truncf %6 : vector<8x128xf32> to vector<8x128xbf16>
    %cst_11 = arith.constant dense<0.000000e+00> : vector<8x256xf32>
    %12 = tpu.matmul %11, %5, %cst_11 {dimension_numbers = #tpu.dot_dimension_numbers<[1], [0], [0], [1], [0, 0, 1, 1], [], []>} : vector<8x128xbf16>, vector<128x256xbf16>, vector<8x256xf32> -> vector<8x256xf32>
    %13 = arith.addf %10, %12 : vector<8x256xf32>
    %14 = vector.extract_strided_slice %13 {offsets = [0, 0], sizes = [8, 128], strides = [1, 1]} : vector<8x256xf32> to vector<8x128xf32>
    %c1_i32 = arith.constant 1 : i32
    %c8_i32_12 = arith.constant 8 : i32
    %15 = arith.muli %c1_i32, %c8_i32_12 : i32
    %16 = tpu.assume_multiple %15, 8 : i32
    %17 = arith.index_cast %16 : i32 to index
    %c0_13 = arith.constant 0 : index
    %18 = vector.load %arg7[%17, %c0_13] : memref<64x256xf32, #tpu.memory_space<vmem>>, vector<8x256xf32>
    %19 = arith.truncf %14 : vector<8x128xf32> to vector<8x128xbf16>
    %cst_14 = arith.constant dense<0.000000e+00> : vector<8x256xf32>
    %20 = tpu.matmul %19, %5, %cst_14 {dimension_numbers = #tpu.dot_dimension_numbers<[1], [0], [0], [1], [0, 0, 1, 1], [], []>} : vector<8x128xbf16>, vector<128x256xbf16>, vector<8x256xf32> -> vector<8x256xf32>
    %21 = arith.addf %18, %20 : vector<8x256xf32>
    %22 = vector.extract_strided_slice %21 {offsets = [0, 0], sizes = [8, 128], strides = [1, 1]} : vector<8x256xf32> to vector<8x128xf32>
    %c2_i32 = arith.constant 2 : i32
    %c8_i32_15 = arith.constant 8 : i32
    %23 = arith.muli %c2_i32, %c8_i32_15 : i32
    %24 = tpu.assume_multiple %23, 8 : i32
    %25 = arith.index_cast %24 : i32 to index
    %c0_16 = arith.constant 0 : index
    %26 = vector.load %arg7[%25, %c0_16] : memref<64x256xf32, #tpu.memory_space<vmem>>, vector<8x256xf32>
    %27 = arith.truncf %22 : vector<8x128xf32> to vector<8x128xbf16>
    %cst_17 = arith.constant dense<0.000000e+00> : vector<8x256xf32>
    %28 = tpu.matmul %27, %5, %cst_17 {dimension_numbers = #tpu.dot_dimension_numbers<[1], [0], [0], [1], [0, 0, 1, 1], [], []>} : vector<8x128xbf16>, vector<128x256xbf16>, vector<8x256xf32> -> vector<8x256xf32>
    %29 = arith.addf %26, %28 : vector<8x256xf32>
    %30 = vector.extract_strided_slice %29 {offsets = [0, 0], sizes = [8, 128], strides = [1, 1]} : vector<8x256xf32> to vector<8x128xf32>
    %c3_i32 = arith.constant 3 : i32
    %c8_i32_18 = arith.constant 8 : i32
    %31 = arith.muli %c3_i32, %c8_i32_18 : i32
    %32 = tpu.assume_multiple %31, 8 : i32
    %33 = arith.index_cast %32 : i32 to index
    %c0_19 = arith.constant 0 : index
    %34 = vector.load %arg7[%33, %c0_19] : memref<64x256xf32, #tpu.memory_space<vmem>>, vector<8x256xf32>
    %35 = arith.truncf %30 : vector<8x128xf32> to vector<8x128xbf16>
    %cst_20 = arith.constant dense<0.000000e+00> : vector<8x256xf32>
    %36 = tpu.matmul %35, %5, %cst_20 {dimension_numbers = #tpu.dot_dimension_numbers<[1], [0], [0], [1], [0, 0, 1, 1], [], []>} : vector<8x128xbf16>, vector<128x256xbf16>, vector<8x256xf32> -> vector<8x256xf32>
    %37 = arith.addf %34, %36 : vector<8x256xf32>
    %38 = vector.extract_strided_slice %37 {offsets = [0, 0], sizes = [8, 128], strides = [1, 1]} : vector<8x256xf32> to vector<8x128xf32>
    %c4_i32 = arith.constant 4 : i32
    %c8_i32_21 = arith.constant 8 : i32
    %39 = arith.muli %c4_i32, %c8_i32_21 : i32
    %40 = tpu.assume_multiple %39, 8 : i32
    %41 = arith.index_cast %40 : i32 to index
    %c0_22 = arith.constant 0 : index
    %42 = vector.load %arg7[%41, %c0_22] : memref<64x256xf32, #tpu.memory_space<vmem>>, vector<8x256xf32>
    %43 = arith.truncf %38 : vector<8x128xf32> to vector<8x128xbf16>
    %cst_23 = arith.constant dense<0.000000e+00> : vector<8x256xf32>
    %44 = tpu.matmul %43, %5, %cst_23 {dimension_numbers = #tpu.dot_dimension_numbers<[1], [0], [0], [1], [0, 0, 1, 1], [], []>} : vector<8x128xbf16>, vector<128x256xbf16>, vector<8x256xf32> -> vector<8x256xf32>
    %45 = arith.addf %42, %44 : vector<8x256xf32>
    %46 = vector.extract_strided_slice %45 {offsets = [0, 0], sizes = [8, 128], strides = [1, 1]} : vector<8x256xf32> to vector<8x128xf32>
    %c5_i32 = arith.constant 5 : i32
    %c8_i32_24 = arith.constant 8 : i32
    %47 = arith.muli %c5_i32, %c8_i32_24 : i32
    %48 = tpu.assume_multiple %47, 8 : i32
    %49 = arith.index_cast %48 : i32 to index
    %c0_25 = arith.constant 0 : index
    %50 = vector.load %arg7[%49, %c0_25] : memref<64x256xf32, #tpu.memory_space<vmem>>, vector<8x256xf32>
    %51 = arith.truncf %46 : vector<8x128xf32> to vector<8x128xbf16>
    %cst_26 = arith.constant dense<0.000000e+00> : vector<8x256xf32>
    %52 = tpu.matmul %51, %5, %cst_26 {dimension_numbers = #tpu.dot_dimension_numbers<[1], [0], [0], [1], [0, 0, 1, 1], [], []>} : vector<8x128xbf16>, vector<128x256xbf16>, vector<8x256xf32> -> vector<8x256xf32>
    %53 = arith.addf %50, %52 : vector<8x256xf32>
    %54 = vector.extract_strided_slice %53 {offsets = [0, 0], sizes = [8, 128], strides = [1, 1]} : vector<8x256xf32> to vector<8x128xf32>
    %c6_i32 = arith.constant 6 : i32
    %c8_i32_27 = arith.constant 8 : i32
    %55 = arith.muli %c6_i32, %c8_i32_27 : i32
    %56 = tpu.assume_multiple %55, 8 : i32
    %57 = arith.index_cast %56 : i32 to index
    %c0_28 = arith.constant 0 : index
    %58 = vector.load %arg7[%57, %c0_28] : memref<64x256xf32, #tpu.memory_space<vmem>>, vector<8x256xf32>
    %59 = arith.truncf %54 : vector<8x128xf32> to vector<8x128xbf16>
    %cst_29 = arith.constant dense<0.000000e+00> : vector<8x256xf32>
    %60 = tpu.matmul %59, %5, %cst_29 {dimension_numbers = #tpu.dot_dimension_numbers<[1], [0], [0], [1], [0, 0, 1, 1], [], []>} : vector<8x128xbf16>, vector<128x256xbf16>, vector<8x256xf32> -> vector<8x256xf32>
    %61 = arith.addf %58, %60 : vector<8x256xf32>
    %62 = vector.extract_strided_slice %61 {offsets = [0, 0], sizes = [8, 128], strides = [1, 1]} : vector<8x256xf32> to vector<8x128xf32>
    %c7_i32 = arith.constant 7 : i32
    %c56 = arith.constant 56 : index
    %c0_30 = arith.constant 0 : index
    %63 = vector.load %arg7[%c56, %c0_30] : memref<64x256xf32, #tpu.memory_space<vmem>>, vector<8x256xf32>
    %64 = arith.truncf %62 : vector<8x128xf32> to vector<8x128xbf16>
    %cst_31 = arith.constant dense<0.000000e+00> : vector<8x256xf32>
    %65 = tpu.matmul %64, %5, %cst_31 {dimension_numbers = #tpu.dot_dimension_numbers<[1], [0], [0], [1], [0, 0, 1, 1], [], []>} : vector<8x128xbf16>, vector<128x256xbf16>, vector<8x256xf32> -> vector<8x256xf32>
    %66 = arith.addf %63, %65 : vector<8x256xf32>
    %67 = vector.extract_strided_slice %66 {offsets = [0, 0], sizes = [8, 128], strides = [1, 1]} : vector<8x256xf32> to vector<8x128xf32>
    %c0_32 = arith.constant 0 : index
    %c0_33 = arith.constant 0 : index
    %68 = vector.load %arg6[%c0_32, %c0_33] : memref<8x128xf32, #tpu.memory_space<vmem>>, vector<8x128xf32>
    tpu.vector_store %arg6[%c0_32, %c0_33], %67 {strides = array<i32>} : memref<8x128xf32, #tpu.memory_space<vmem>>, vector<8x128xf32>,
    %69 = vector.extract_strided_slice %66 {offsets = [0, 128], sizes = [8, 128], strides = [1, 1]} : vector<8x256xf32> to vector<8x128xf32>
    %cst_34 = arith.constant dense<0xFF800000> : vector<8xf32>
    %70 = vector.multi_reduction <maximumf>, %69, %cst_34 [1] : vector<8x128xf32> to vector<8xf32>
    %71 = vector.shape_cast %70 : vector<8xf32> to vector<8x1xf32>
    %72 = vector.broadcast %71 : vector<8x1xf32> to vector<8x128xf32>
    %73 = arith.subf %69, %72 : vector<8x128xf32>
    %74 = math.exp %73 : vector<8x128xf32>
    %cst_35 = arith.constant dense<0.000000e+00> : vector<8xf32>
    %75 = vector.multi_reduction <add>, %74, %cst_35 [1] : vector<8x128xf32> to vector<8xf32>
    %76 = vector.shape_cast %75 : vector<8xf32> to vector<8x1xf32>
    %77 = math.log %76 : vector<8x1xf32>
    %78 = vector.broadcast %77 : vector<8x1xf32> to vector<8x128xf32>
    %79 = arith.subf %73, %78 : vector<8x128xf32>
    %c0_36 = arith.constant 0 : index
    %c0_37 = arith.constant 0 : index
    %80 = vector.load %arg5[%c0_36, %c0_37] : memref<8x128xf32, #tpu.memory_space<vmem>>, vector<8x128xf32>
    tpu.vector_store %arg5[%c0_36, %c0_37], %79 {strides = array<i32>} : memref<8x128xf32, #tpu.memory_space<vmem>>, vector<8x128xf32>,
    return
  }
  func.func @transform_0(%arg0: i32) -> (i32, i32, i32) {
    %c0_i32 = arith.constant 0 : i32
    %c0_i32_0 = arith.constant 0 : i32
    %c0_i32_1 = arith.constant 0 : i32
    return %arg0, %c0_i32, %c0_i32_0 : i32, i32, i32
  }
  func.func @transform_1(%arg0: i32) -> (i32, i32) {
    %c0_i32 = arith.constant 0 : i32
    %c0_i32_0 = arith.constant 0 : i32
    return %arg0, %c0_i32 : i32, i32
  }
  func.func @transform_2(%arg0: i32) -> (i32, i32) {
    %c0_i32 = arith.constant 0 : i32
    %c0_i32_0 = arith.constant 0 : i32
    %c0_i32_1 = arith.constant 0 : i32
    return %c0_i32, %c0_i32_0 : i32, i32
  }
  func.func @transform_3(%arg0: i32) -> (i32, i32) {
    %c0_i32 = arith.constant 0 : i32
    %c0_i32_0 = arith.constant 0 : i32
    %c0_i32_1 = arith.constant 0 : i32
    return %c0_i32, %c0_i32_0 : i32, i32
  }
  func.func @transform_4(%arg0: i32) -> (i32, i32) {
    %c0_i32 = arith.constant 0 : i32
    %c0_i32_0 = arith.constant 0 : i32
    return %arg0, %c0_i32 : i32, i32
  }
  func.func @transform_5(%arg0: i32) -> (i32, i32) {
    %c0_i32 = arith.constant 0 : i32
    %c0_i32_0 = arith.constant 0 : i32
    return %arg0, %c0_i32 : i32, i32
  }
}

</mosaic_0001>

<bundles_post_ra>
// kernel: rnn_sequence.1
= control target key start
LH: loop header
LB: loop body
LE: loop exit
PB: predicated region body
PF: predicated region fallthrough
CT: control target
= control target key end

     0   :  { %v732_v1 = vmov 0   ;;  %vm72_vm0 = vcmask 261120   ;;  %s1038_s3 = inlined_call_operand.vmem [shape: bf16[128,256], index: 3, kind: input, shape index: {}]   ;;  %s1039_s2 = inlined_call_operand.vmem [shape: bf16[32,256], index: 2, kind: input, shape index: {}]   ;;  %s1040_s0 = inlined_call_operand.vmem [shape: bf16[1,64,32], index: 0, kind: input, shape index: {}]   ;;  %s1041_s1 = inlined_call_operand.vmem [shape: f32[8,128], index: 1, kind: input, shape index: {}]   ;;  %s1042_s5 = inlined_call_operand.vmem [shape: f32[8,128], index: 5, kind: output, shape index: {1}]   ;;  %s1043_s4 = inlined_call_operand.vmem [shape: f32[8,128], index: 4, kind: output, shape index: {0}]  }
   0x1   :  { %v766_v0 = vld [vmem:[%s1038_s3 + $0x74] ss:$8 sps:$4 sm:$0xff]   ;;  %117 = vmatprep.mubr.bf16.mxu0 %v732_v1  ;;  %308 = vmatprep.mubr.bf16.mxu1 %v732_v1  ;;  %v773_v2 = vld [vmem:[%s1038_s3 + $0x70] ss:$8 sps:$4 sm:$0xff]   ;;  %v779_v3 = vld [vmem:[%s1038_s3 + $0x64] ss:$8 sps:$4 sm:$0xff]  }
   0x2   :  { %276 = vmatprep.subr.bf16.mxu1 %v766_v0  ;;  %v785_v4 = vld [vmem:[%s1038_s3 + $0x60] ss:$8 sps:$4 sm:$0xff]   ;;  %v791_v5 = vld [vmem:[%s1038_s3 + $0x54] ss:$8 sps:$4 sm:$0xff]   ;;  %v796_v6 = vld [vmem:[%s1038_s3 + $0x50] ss:$8 sps:$4 sm:$0xff]  }
   0x3   :  { %277 = vmatpush1.bf16.msra.mxu1 %v773_v2  ;;  %v709_v7 = vld [vmem:[%s1039_s2 + $0x14] ss:$8 sps:$4 sm:$0xff]   ;;  %v711_v8 = vld [vmem:[%s1039_s2 + $0x10] ss:$8 sps:$4 sm:$0xff]   ;;  %v809_v9 = vld [vmem:[%s1038_s3 + $0x44] ss:$8 sps:$4 sm:$0xff]  }
   0x4   :  { %278 = vmatprep.subr.bf16.mxu1 %v779_v3  ;;  %97 = vmatprep.subr.bf16.mxu0 %v709_v7  ;;  %v715_v10 = vld [vmem:[%s1039_s2 + $0x4] ss:$8 sps:$4 sm:$0xff]   ;;  %v717_v11 = vld [vmem:[%s1039_s2] ss:$8 sps:$4 sm:$0xff]   ;;  %v827_v13 = vld [vmem:[%s1038_s3 + $0x34] ss:$8 sps:$4 sm:$0xff]  }
   0x5   :  { %98 = vmatpush1.bf16.msra.mxu0 %v711_v8  ;;  %v821_v12 = vld [vmem:[%s1038_s3 + $0x40] ss:$8 sps:$4 sm:$0xff]   ;;  %v836_v15 = vld [vmem:[%s1038_s3 + $0x30] ss:$8 sps:$4 sm:$0xff]   ;;  %v843_v16 = vld [vmem:[%s1038_s3 + $0x24] ss:$8 sps:$4 sm:$0xff]  }
   0x6   :  { %99 = vmatprep.subr.bf16.mxu0 %v715_v10  ;;  %v721_v14 = vld [vmem:[%s1040_s0] sm:$0xff]   ;;  %v859_v18 = vld [vmem:[%s1038_s3 + $0x14] ss:$8 sps:$4 sm:$0xff]   ;;  %v725_v19 = vld [vmem:[%s1040_s0 + $0x8] sm:$0xff]  }
   0x7   :  { %279 = vmatpush1.bf16.msra.mxu1 %v785_v4  ;;  %v852_v17 = vld [vmem:[%s1038_s3 + $0x20] ss:$8 sps:$4 sm:$0xff]   ;;  %v869_v20 = vld [vmem:[%s1038_s3 + $0x10] ss:$8 sps:$4 sm:$0xff]   ;;  %v876_v21 = vld [vmem:[%s1038_s3 + $0x4] ss:$8 sps:$4 sm:$0xff]  }
   0x8   :  { %280 = vmatprep.subr.bf16.mxu1 %v791_v5  ;;  %v885_v22 = vld [vmem:[%s1038_s3] ss:$8 sps:$4 sm:$0xff]   ;;  %v726_v24 = vld [vmem:[%s1040_s0 + $0x10] sm:$0xff]   ;;  %v727_v26 = vld [vmem:[%s1040_s0 + $0x18] sm:$0xff]  }
   0x9   :  { %100 = vmatpush1.bf16.msra.mxu0 %v717_v11  ;;  %v190_v23 = vld [vmem:[%s1041_s1] sm:$0xff] }
   0xa   :  { %322 = vmatprep.subr.bf16.mxu0 %v766_v0  ;;  %v195_v25 = vpack.c.bf16 %v190_v23, %v190_v23 }
   0xb   :  { %281 = vmatpush1.bf16.msra.mxu1 %v796_v6 }
   0xc   :  { %282 = vmatprep.subr.bf16.mxu1 %v809_v9  ;;  %673 = vmatmul.mubr.msk.bf16.vlgmr.msra.gmra.mxu0 %vm72_vm0, %v721_v14 }
   0xd   :  { %323 = vmatpush1.bf16.msra.mxu0 %v773_v2  ;;  %127 = vmatprep.mubr.bf16.mxu0 %v732_v1 }
   0xe   :  { %324 = vmatprep.subr.bf16.mxu0 %v779_v3 }
   0xf   :  { %283 = vmatpush1.bf16.msra.mxu1 %v821_v12 }
  0x10   :  { %284 = vmatprep.subr.bf16.mxu1 %v827_v13 }
  0x11   :  { %325 = vmatpush1.bf16.msra.mxu0 %v785_v4 }
  0x12   :  { %326 = vmatprep.subr.bf16.mxu0 %v791_v5 }
  0x13   :  { %285 = vmatpush1.bf16.msra.mxu1 %v836_v15 }
  0x14   :  { %286 = vmatprep.subr.bf16.mxu1 %v843_v16  ;;  %674 = vmatmul.mubr.msk.bf16.gmra.mxu0 %vm72_vm0, %v725_v19 }
  0x15   :  { %327 = vmatpush1.bf16.msra.mxu0 %v796_v6  ;;  %137 = vmatprep.mubr.bf16.mxu0 %v732_v1 }
  0x16   :  { %328 = vmatprep.subr.bf16.mxu0 %v809_v9 }
  0x17   :  { %287 = vmatpush1.bf16.msra.mxu1 %v852_v17 }
  0x18   :  { %288 = vmatprep.subr.bf16.mxu1 %v859_v18 }
  0x19   :  { %329 = vmatpush1.bf16.msra.mxu0 %v821_v12 }
  0x1a   :  { %330 = vmatprep.subr.bf16.mxu0 %v827_v13 }
  0x1b   :  { %289 = vmatpush1.bf16.msra.mxu1 %v869_v20 }
  0x1c   :  { %290 = vmatprep.subr.bf16.mxu1 %v876_v21  ;;  %675 = vmatmul.mubr.msk.bf16.gmra.mxu0 %vm72_vm0, %v726_v24 }
  0x1d   :  { %331 = vmatpush1.bf16.msra.mxu0 %v836_v15  ;;  %147 = vmatprep.mubr.bf16.mxu0 %v732_v1 }
  0x1e   :  { %332 = vmatprep.subr.bf16.mxu0 %v843_v16 }
  0x1f   :  { %291 = vmatpush1.bf16.msra.mxu1 %v885_v22 }
  0x20   :  { %368 = vmatprep.subr.bf16.mxu1 %v766_v0 }
  0x21   :  { %333 = vmatpush1.bf16.msra.mxu0 %v852_v17 }
  0x22   :  { %309 = vmatmul.mubr.bf16.vlgmr.msra.gmra.mxu1 %v195_v25  ;;  %334 = vmatprep.subr.bf16.mxu0 %v859_v18 }
  0x23   :  { %369 = vmatpush1.bf16.msra.mxu1 %v773_v2  ;;  %400 = vmatprep.mubr.bf16.mxu1 %v732_v1 }
  0x24   :  { %370 = vmatprep.subr.bf16.mxu1 %v779_v3  ;;  %676 = vmatmul.mubr.msk.bf16.gmra.mxu0 %vm72_vm0, %v727_v26 }
  0x25   :  { %335 = vmatpush1.bf16.msra.mxu0 %v869_v20  ;;  %354 = vmatprep.mubr.bf16.mxu0 %v732_v1 }
  0x26   :  { %336 = vmatprep.subr.bf16.mxu0 %v876_v21 }
  0x27   :  { %371 = vmatpush1.bf16.msra.mxu1 %v785_v4 }
  0x28   :  { %372 = vmatprep.subr.bf16.mxu1 %v791_v5 }
  0x29   :  { %337 = vmatpush1.bf16.msra.mxu0 %v885_v22 }
  0x2a   :  { %414 = vmatprep.subr.bf16.mxu0 %v766_v0 }
  0x2b   :  { %373 = vmatpush1.bf16.msra.mxu1 %v796_v6 }
  0x2c   :  { %374 = vmatprep.subr.bf16.mxu1 %v809_v9 }
  0x2f   :  { %375 = vmatpush1.bf16.msra.mxu1 %v821_v12 }
  0x30   :  { %376 = vmatprep.subr.bf16.mxu1 %v827_v13 }
  0x33   :  { %377 = vmatpush1.bf16.msra.mxu1 %v836_v15 }
  0x34   :  { %378 = vmatprep.subr.bf16.mxu1 %v843_v16 }
  0x37   :  { %379 = vmatpush1.bf16.msra.mxu1 %v852_v17 }
  0x38   :  { %380 = vmatprep.subr.bf16.mxu1 %v859_v18 }
  0x3b   :  { %381 = vmatpush1.bf16.msra.mxu1 %v869_v20 }
  0x3c   :  { %382 = vmatprep.subr.bf16.mxu1 %v876_v21 }
  0x3f   :  { %383 = vmatpush1.bf16.msra.mxu1 %v885_v22 }
  0x40   :  { %460 = vmatprep.subr.bf16.mxu1 %v766_v0 }
  0xcc   :  { %v119_v27 = vpop.f32.mrf.mxu0 }
  0xce   :  { %v121_v28 = vpop.f32.mrf.mxu0 }
  0xd0   :  { %v123_v29 = vpop.f32.mrf.mxu0 }
  0xd2   :  { %v125_v30 = vpop.f32.mrf.mxu0 }
  0xd4   :  { %v129_v31 = vpop.f32.mrf.mxu0 }
  0xd6   :  { %v131_v32 = vpop.f32.mrf.mxu0 }
  0xd8   :  { %v931_v33 = vpop.f32.mrf.mxu0 }
  0xda   :  { %v135_v34 = vpop.f32.mrf.mxu0 }
  0xdc   :  { %v933_v35 = vpop.f32.mrf.mxu0 }
  0xde   :  { %v141_v38 = vpop.f32.mrf.mxu0 }
  0xe0   :  { %v935_v41 = vpop.f32.mrf.mxu0 }
  0xe2   :  { %v310_v36 = vpop.f32.mrf.mxu1  ;;  %v145_v43 = vpop.f32.mrf.mxu0 }
  0xe3   :  { %v316_v37 = vadd.f32 %v310_v36, %v119_v27 }
  0xe4   :  { %v312_v39 = vpop.f32.mrf.mxu1  ;;  %v939_v45 = vpop.f32.mrf.mxu0 }
  0xe5   :  { %v321_v40 = vpack.c.bf16 %v316_v37, %v316_v37 }
  0xe6   :  { %v313_v42 = vpop.f32.mrf.mxu1  ;;  %v151_v46 = vpop.f32.mrf.mxu0 }
  0xe7   :  { %355 = vmatmul.mubr.bf16.vlgmr.msra.gmra.mxu0 %v321_v40 }
  0xe8   :  { %v314_v44 = vpop.f32.mrf.mxu1  ;;  %415 = vmatpush1.bf16.msra.mxu0 %v773_v2  ;;  %446 = vmatprep.mubr.bf16.mxu0 %v732_v1  ;;  %v956_v47 = vpop.f32.mrf.mxu0 }
  0xe9   :  { %416 = vmatprep.subr.bf16.mxu0 %v779_v3 }
  0xea   :  { %v958_v48 = vpop.f32.mrf.mxu0 }
  0xec   :  { %417 = vmatpush1.bf16.msra.mxu0 %v785_v4 }
  0xed   :  { %418 = vmatprep.subr.bf16.mxu0 %v791_v5 }
  0xf0   :  { %419 = vmatpush1.bf16.msra.mxu0 %v796_v6 }
  0xf1   :  { %420 = vmatprep.subr.bf16.mxu0 %v809_v9 }
  0xf4   :  { %421 = vmatpush1.bf16.msra.mxu0 %v821_v12 }
  0xf5   :  { %422 = vmatprep.subr.bf16.mxu0 %v827_v13 }
  0xf8   :  { %423 = vmatpush1.bf16.msra.mxu0 %v836_v15 }
  0xf9   :  { %424 = vmatprep.subr.bf16.mxu0 %v843_v16 }
  0xfc   :  { %425 = vmatpush1.bf16.msra.mxu0 %v852_v17 }
  0xfd   :  { %426 = vmatprep.subr.bf16.mxu0 %v859_v18 }
 0x100   :  { %427 = vmatpush1.bf16.msra.mxu0 %v869_v20 }
 0x101   :  { %428 = vmatprep.subr.bf16.mxu0 %v876_v21 }
 0x104   :  { %429 = vmatpush1.bf16.msra.mxu0 %v885_v22 }
 0x105   :  { %506 = vmatprep.subr.bf16.mxu0 %v766_v0 }
 0x1a7   :  { %v356_v49 = vpop.f32.mrf.mxu0 }
 0x1a8   :  { %v362_v50 = vadd.f32 %v356_v49, %v123_v29 }
 0x1a9   :  { %v358_v51 = vpop.f32.mrf.mxu0 }
 0x1aa   :  { %v367_v52 = vpack.c.bf16 %v362_v50, %v362_v50 }
 0x1ab   :  { %v359_v53 = vpop.f32.mrf.mxu0 }
 0x1ac   :  { %401 = vmatmul.mubr.bf16.vlgmr.msra.gmra.mxu1 %v367_v52 }
 0x1ad   :  { %v360_v54 = vpop.f32.mrf.mxu0  ;;  %461 = vmatpush1.bf16.msra.mxu1 %v773_v2  ;;  %492 = vmatprep.mubr.bf16.mxu1 %v732_v1 }
 0x1ae   :  { %462 = vmatprep.subr.bf16.mxu1 %v779_v3 }
 0x1b1   :  { %463 = vmatpush1.bf16.msra.mxu1 %v785_v4 }
 0x1b2   :  { %464 = vmatprep.subr.bf16.mxu1 %v791_v5 }
 0x1b5   :  { %465 = vmatpush1.bf16.msra.mxu1 %v796_v6 }
 0x1b6   :  { %466 = vmatprep.subr.bf16.mxu1 %v809_v9 }
 0x1b9   :  { %467 = vmatpush1.bf16.msra.mxu1 %v821_v12 }
 0x1ba   :  { %468 = vmatprep.subr.bf16.mxu1 %v827_v13 }
 0x1bd   :  { %469 = vmatpush1.bf16.msra.mxu1 %v836_v15 }
 0x1be   :  { %470 = vmatprep.subr.bf16.mxu1 %v843_v16 }
 0x1c1   :  { %471 = vmatpush1.bf16.msra.mxu1 %v852_v17 }
 0x1c2   :  { %472 = vmatprep.subr.bf16.mxu1 %v859_v18 }
 0x1c5   :  { %473 = vmatpush1.bf16.msra.mxu1 %v869_v20 }
 0x1c6   :  { %474 = vmatprep.subr.bf16.mxu1 %v876_v21 }
 0x1c9   :  { %475 = vmatpush1.bf16.msra.mxu1 %v885_v22 }
 0x1ca   :  { %552 = vmatprep.subr.bf16.mxu1 %v766_v0 }
 0x26c   :  { %v402_v55 = vpop.f32.mrf.mxu1 }
 0x26d   :  { %v408_v56 = vadd.f32 %v402_v55, %v129_v31 }
 0x26e   :  { %v404_v57 = vpop.f32.mrf.mxu1 }
 0x26f   :  { %v413_v58 = vpack.c.bf16 %v408_v56, %v408_v56 }
 0x270   :  { %v405_v59 = vpop.f32.mrf.mxu1 }
 0x271   :  { %447 = vmatmul.mubr.bf16.vlgmr.msra.gmra.mxu0 %v413_v58 }
 0x272   :  { %v406_v60 = vpop.f32.mrf.mxu1  ;;  %507 = vmatpush1.bf16.msra.mxu0 %v773_v2  ;;  %538 = vmatprep.mubr.bf16.mxu0 %v732_v1 }
 0x273   :  { %508 = vmatprep.subr.bf16.mxu0 %v779_v3 }
 0x276   :  { %509 = vmatpush1.bf16.msra.mxu0 %v785_v4 }
 0x277   :  { %510 = vmatprep.subr.bf16.mxu0 %v791_v5 }
 0x27a   :  { %511 = vmatpush1.bf16.msra.mxu0 %v796_v6 }
 0x27b   :  { %512 = vmatprep.subr.bf16.mxu0 %v809_v9 }
 0x27e   :  { %513 = vmatpush1.bf16.msra.mxu0 %v821_v12 }
 0x27f   :  { %514 = vmatprep.subr.bf16.mxu0 %v827_v13 }
 0x282   :  { %515 = vmatpush1.bf16.msra.mxu0 %v836_v15 }
 0x283   :  { %516 = vmatprep.subr.bf16.mxu0 %v843_v16 }
 0x286   :  { %517 = vmatpush1.bf16.msra.mxu0 %v852_v17 }
 0x287   :  { %518 = vmatprep.subr.bf16.mxu0 %v859_v18 }
 0x28a   :  { %519 = vmatpush1.bf16.msra.mxu0 %v869_v20 }
 0x28b   :  { %520 = vmatprep.subr.bf16.mxu0 %v876_v21 }
 0x28e   :  { %521 = vmatpush1.bf16.msra.mxu0 %v885_v22 }
 0x28f   :  { %596 = vmatprep.subr.bf16.mxu0 %v766_v0 }
 0x331   :  { %v448_v61 = vpop.f32.mrf.mxu0 }
 0x332   :  { %v454_v62 = vadd.f32 %v448_v61, %v931_v33 }
 0x333   :  { %v450_v63 = vpop.f32.mrf.mxu0 }
 0x334   :  { %v459_v7 = vpack.c.bf16 %v454_v62, %v454_v62 }
 0x335   :  { %v451_v8 = vpop.f32.mrf.mxu0 }
 0x336   :  { %493 = vmatmul.mubr.bf16.vlgmr.msra.gmra.mxu1 %v459_v7 }
 0x337   :  { %v452_v10 = vpop.f32.mrf.mxu0  ;;  %553 = vmatpush1.bf16.msra.mxu1 %v773_v2  ;;  %584 = vmatprep.mubr.bf16.mxu1 %v732_v1 }
 0x338   :  { %554 = vmatprep.subr.bf16.mxu1 %v779_v3 }
 0x33b   :  { %555 = vmatpush1.bf16.msra.mxu1 %v785_v4 }
 0x33c   :  { %556 = vmatprep.subr.bf16.mxu1 %v791_v5 }
 0x33f   :  { %557 = vmatpush1.bf16.msra.mxu1 %v796_v6 }
 0x340   :  { %558 = vmatprep.subr.bf16.mxu1 %v809_v9 }
 0x343   :  { %559 = vmatpush1.bf16.msra.mxu1 %v821_v12 }
 0x344   :  { %560 = vmatprep.subr.bf16.mxu1 %v827_v13 }
 0x347   :  { %561 = vmatpush1.bf16.msra.mxu1 %v836_v15 }
 0x348   :  { %562 = vmatprep.subr.bf16.mxu1 %v843_v16 }
 0x34b   :  { %563 = vmatpush1.bf16.msra.mxu1 %v852_v17 }
 0x34c   :  { %564 = vmatprep.subr.bf16.mxu1 %v859_v18 }
 0x34f   :  { %565 = vmatpush1.bf16.msra.mxu1 %v869_v20 }
 0x350   :  { %566 = vmatprep.subr.bf16.mxu1 %v876_v21 }
 0x353   :  { %567 = vmatpush1.bf16.msra.mxu1 %v885_v22 }
 0x3f6   :  { %v494_v0 = vpop.f32.mrf.mxu1 }
 0x3f7   :  { %v500_v11 = vadd.f32 %v494_v0, %v933_v35 }
 0x3f8   :  { %v496_v14 = vpop.f32.mrf.mxu1 }
 0x3f9   :  { %v505_v19 = vpack.c.bf16 %v500_v11, %v500_v11 }
 0x3fa   :  { %v497_v23 = vpop.f32.mrf.mxu1 }
 0x3fb   :  { %539 = vmatmul.mubr.bf16.vlgmr.msra.gmra.mxu0 %v505_v19 }
 0x3fc   :  { %v498_v24 = vpop.f32.mrf.mxu1  ;;  %597 = vmatpush1.bf16.msra.mxu0 %v773_v2  ;;  %628 = vmatprep.mubr.bf16.mxu0 %v732_v1 }
 0x3fd   :  { %598 = vmatprep.subr.bf16.mxu0 %v779_v3 }
 0x400   :  { %599 = vmatpush1.bf16.msra.mxu0 %v785_v4 }
 0x401   :  { %600 = vmatprep.subr.bf16.mxu0 %v791_v5 }
 0x404   :  { %601 = vmatpush1.bf16.msra.mxu0 %v796_v6 }
 0x405   :  { %602 = vmatprep.subr.bf16.mxu0 %v809_v9 }
 0x408   :  { %603 = vmatpush1.bf16.msra.mxu0 %v821_v12 }
 0x409   :  { %604 = vmatprep.subr.bf16.mxu0 %v827_v13 }
 0x40c   :  { %605 = vmatpush1.bf16.msra.mxu0 %v836_v15 }
 0x40d   :  { %606 = vmatprep.subr.bf16.mxu0 %v843_v16 }
 0x410   :  { %607 = vmatpush1.bf16.msra.mxu0 %v852_v17 }
 0x411   :  { %608 = vmatprep.subr.bf16.mxu0 %v859_v18 }
 0x414   :  { %609 = vmatpush1.bf16.msra.mxu0 %v869_v20 }
 0x415   :  { %610 = vmatprep.subr.bf16.mxu0 %v876_v21 }
 0x418   :  { %611 = vmatpush1.bf16.msra.mxu0 %v885_v22 }
 0x4bb   :  { %v540_v1 = vpop.f32.mrf.mxu0 }
 0x4bc   :  { %v546_v2 = vadd.f32 %v540_v1, %v935_v41 }
 0x4bd   :  { %v542_v3 = vpop.f32.mrf.mxu0 }
 0x4be   :  { %v551_v4 = vpack.c.bf16 %v546_v2, %v546_v2 }
 0x4bf   :  { %v543_v5 = vpop.f32.mrf.mxu0 }
 0x4c0   :  { %585 = vmatmul.mubr.bf16.vlgmr.msra.gmra.mxu1 %v551_v4 }
 0x4c1   :  { %v544_v6 = vpop.f32.mrf.mxu0 }
 0x580   :  { %v586_v9 = vpop.f32.mrf.mxu1 }
 0x581   :  { %v592_v12 = vadd.f32 %v586_v9, %v939_v45 }
 0x582   :  { %v588_v13 = vpop.f32.mrf.mxu1 }
 0x583   :  { %v595_v15 = vpack.c.bf16 %v592_v12, %v592_v12 }
 0x584   :  { %v589_v16 = vpop.f32.mrf.mxu1 }
 0x585   :  { %629 = vmatmul.mubr.bf16.vlgmr.msra.gmra.mxu0 %v595_v15 }
 0x586   :  { %v590_v17 = vpop.f32.mrf.mxu1 }
 0x645   :  { %v630_v18 = vpop.f32.mrf.mxu0 }
 0x646   :  { %v637_v20 = vadd.f32 %v630_v18, %v956_v47 }
 0x647   :  { %v632_v21 = vpop.f32.mrf.mxu0 }
 0x648   :  { %639 = vst [vmem:[%s1042_s5] sm:$0xff] %v637_v20  ;;  %v638_v22 = vadd.f32 %v632_v21, %v958_v48 }
 0x649   :  { %v634_v25 = vpop.f32.mrf.mxu0 }
 0x64a   :  { %640 = vmax.xlane.f32.xlu0 %v638_v22 }
 0x64b   :  { %v635_v26 = vpop.f32.mrf.mxu0 }
 0x6d3   :  { %v641_v27 = vpop.xlane.xlu0 %640 }
 0x6d4   :  { %v642_v28 = vsub.f32 %v638_v22, %v641_v27 }
 0x6d6   :  { %v643_v29 = vmul.f32 1.442695, %v642_v28 }
 0x6d8   :  { %728 = vpow2.f32 %v643_v29 }
 0x6e5   :  { %v729_v30 = vpop.eup %728 }
 0x6e6   :  { %645 = vadd.xlane.f32.xlu0 %v729_v30 }
 0x76f   :  { %v646_v31 = vpop.xlane.xlu0 %645 }
 0x770   :  { %730 = vlog2.f32 %v646_v31 }
 0x77d   :  { %v731_v32 = vpop.eup %730 }
 0x77e   :  { %v648_v33 = vmul.f32 0.6931472, %v731_v32 }
 0x780   :  { %v649_v34 = vsub.f32 %v642_v28, %v648_v33 }
 0x782   :  { %650 = vst [vmem:[%s1043_s4] sm:$0xff] %v649_v34 }

</bundles_post_ra>
